<compile_context>
chip_gen: v7x
topology: tpu7x:2x2x1
jax: 0.10.0
libtpu: 0.0.40
codegen_flags: <defaults>
</compile_context>

<pallas_src>
import functools

import jax
import jax.numpy as jnp
from jax.experimental import pallas as pl
from jax.experimental.pallas import tpu as pltpu

LANES = 128
SUBLANES = 8
MAX_TILE_ROWS = 8192                 # 8192 x 128 x 4 B = 4 MiB per input per step
VMEM_LIMIT_BYTES = 32 * 1024 * 1024  # fits v5e/v6e/v7x scoped budgets


def _round_up(x, m):
    return (x + m - 1) // m * m


def _tensorcores_per_chip():
    """2 TensorCores per chip on v7x, 1 on v5e/v6e. Detect defensively."""
    try:
        kind = jax.local_devices()[0].device_kind.lower()
        if "v7" in kind:
            return 2
    except Exception:
        pass
    return 1


def _mse_kernel(p_ref, g_ref, o_ref, *, rows_total, tile_rows, n_inner):
    c = pl.program_id(0)   # core-split index ("parallel")
    i = pl.program_id(1)   # reduction step   ("arbitrary")

    @pl.when(i == 0)
    def _init():
        o_ref[...] = jnp.zeros_like(o_ref)

    # Global tile id (UNclamped): used to decide whether this tile can overhang
    # the real data, and to build the row mask when it does.
    tile_idx = c * n_inner + i
    row_start = tile_idx * tile_rows
    in_bounds = row_start + tile_rows <= rows_total

    def _fold(dsq):
        # Fold rows into sublane groups of 8: pure VPU adds into the resident
        # (8, 128) output block; no per-step XLU cross-lane reduce.
        return jnp.sum(dsq.reshape(tile_rows // SUBLANES, SUBLANES, LANES), axis=0)

    @pl.when(in_bounds)
    def _fast():
        # Steady-state interior tile: no iota / compare / select work at all.
        d = p_ref[...].astype(jnp.float32) - g_ref[...].astype(jnp.float32)
        o_ref[...] += _fold(d * d)

    @pl.when(jnp.logical_not(in_bounds))
    def _masked():
        # Last real tile and clamped fully-OOB steps: mask with the TRUE global
        # row index so out-of-range rows (possibly NaN/Inf garbage) contribute 0.
        row_ids = row_start + jax.lax.broadcasted_iota(
            jnp.int32, (tile_rows, LANES), 0)
        valid = row_ids < rows_total
        d = p_ref[...].astype(jnp.float32) - g_ref[...].astype(jnp.float32)
        o_ref[...] += _fold(jnp.where(valid, d * d, 0.0))


def mse_loss_pallas(preds, gts):
    """Equivalent of F.mse_loss(preds.view(-1), gts.view(-1)) (mean reduction)."""
    p = preds.reshape(-1)
    g = gts.reshape(-1)
    n_true = p.shape[0]
    assert g.shape[0] == n_true, "preds and gts must have the same number of elements"
    if n_true == 0:
        # torch returns NaN for the mean over an empty tensor.
        return jnp.float32(jnp.nan)

    # Pad only when the element count is not lane-aligned (<= 127 zeros; zeros
    # contribute nothing to the sum, and we divide by the TRUE count below).
    rem = n_true % LANES
    if rem:
        pad = LANES - rem
        p = jnp.pad(p, (0, pad))
        g = jnp.pad(g, (0, pad))
    rows_total = p.shape[0] // LANES
    p2 = p.reshape(rows_total, LANES)   # contiguous reshape: no copy
    g2 = g.reshape(rows_total, LANES)

    tile_rows = min(MAX_TILE_ROWS, _round_up(rows_total, SUBLANES))
    n_tiles = pl.cdiv(rows_total, tile_rows)
    num_splits = max(1, min(_tensorcores_per_chip(), n_tiles))
    n_inner = pl.cdiv(n_tiles, num_splits)

    def in_map(c, i):
        # Clamp fully out-of-range trailing tiles of the last core split onto
        # the final valid block; the in-kernel mask zeroes their contribution.
        t = jnp.minimum(c * n_inner + i, n_tiles - 1)
        return (t, 0)

    kernel = functools.partial(
        _mse_kernel, rows_total=rows_total, tile_rows=tile_rows, n_inner=n_inner)

    partials = pl.pallas_call(
        kernel,
        out_shape=jax.ShapeDtypeStruct((num_splits * SUBLANES, LANES), jnp.float32),
        grid_spec=pltpu.PrefetchScalarGridSpec(
            num_scalar_prefetch=0,
            grid=(num_splits, n_inner),
            in_specs=[
                pl.BlockSpec((tile_rows, LANES), in_map),
                pl.BlockSpec((tile_rows, LANES), in_map),
            ],
            out_specs=pl.BlockSpec((SUBLANES, LANES), lambda c, i: (c, 0)),
        ),
        compiler_params=pltpu.CompilerParams(
            dimension_semantics=("parallel", "arbitrary"),
            vmem_limit_bytes=VMEM_LIMIT_BYTES,
        ),
    )(p2, g2)

    # Tiny final reduction (<= 2 KiB) + divide by the TRUE element count.
    return jnp.sum(partials) / jnp.float32(n_true)


if __name__ == "__main__":
    key = jax.random.PRNGKey(0)

    # 1) Shape from the module spec: NCHW [2, 4, 16, 16].
    k1, k2 = jax.random.split(key)
    preds = jax.random.normal(k1, (2, 4, 16, 16), dtype=jnp.float32)
    gts = jax.random.normal(k2, (2, 4, 16, 16), dtype=jnp.float32)
    loss = mse_loss_pallas(preds, gts)
    jax.block_until_ready(loss)
    ref = jnp.mean((preds.reshape(-1) - gts.reshape(-1)) ** 2)
    assert jnp.allclose(loss, ref, rtol=1e-5, atol=1e-6), (loss, ref)

    # 2) Lane-unaligned shape (exercises the tiny-pad + masked-tile path).
    k3, k4 = jax.random.split(k1)
    a = jax.random.normal(k3, (3, 5, 7), dtype=jnp.float32)
    b = jax.random.normal(k4, (3, 5, 7), dtype=jnp.float32)
    loss2 = mse_loss_pallas(a, b)
    jax.block_until_ready(loss2)
    ref2 = jnp.mean((a.reshape(-1) - b.reshape(-1)) ** 2)
    assert jnp.allclose(loss2, ref2, rtol=1e-5, atol=1e-6), (loss2, ref2)

    # 3) Multi-tile path (fast interior tile + masked partial last tile).
    k5, k6 = jax.random.split(k2)
    c = jax.random.normal(k5, (1026, 1024), dtype=jnp.float32)
    d = jax.random.normal(k6, (1026, 1024), dtype=jnp.float32)
    loss3 = mse_loss_pallas(c, d)
    jax.block_until_ready(loss3)
    ref3 = jnp.mean((c.reshape(-1) - d.reshape(-1)) ** 2)
    assert jnp.allclose(loss3, ref3, rtol=1e-4, atol=1e-6), (loss3, ref3)

    print("KERNEL_OK")
</pallas_src>

<mosaic_0001>
module attributes {stable_mosaic.version = 11 : i64} {
  func.func @_mse_kernel(%arg0: i32, %arg1: i32, %arg2: memref<16x128xf32, #tpu.memory_space<vmem>>, %arg3: memref<16x128xf32, #tpu.memory_space<vmem>>, %arg4: memref<8x128xf32, #tpu.memory_space<vmem>>) attributes {dimension_semantics = [#tpu.dimension_semantics<parallel>, #tpu.dimension_semantics<arbitrary>], iteration_bounds = array<i64: 1, 1>, scalar_prefetch = 0 : i64, scratch_operands = 0 : i64, tpu.core_type = #tpu.core_type<tc>, window_params = [{transform_indices = @transform_0, window_bounds = array<i64: 16, 128>}, {transform_indices = @transform_1, window_bounds = array<i64: 16, 128>}, {transform_indices = @transform_2, window_bounds = array<i64: 8, 128>}]} {
    %c0_i32 = arith.constant 0 : i32
    %0 = arith.cmpi eq, %arg1, %c0_i32 : i32
    %1 = arith.extui %0 : i1 to i32
    %c0_i32_0 = arith.constant 0 : i32
    %2 = arith.cmpi ne, %1, %c0_i32_0 : i32
    scf.if %2 {
      %cst = arith.constant 0.000000e+00 : f32
      %13 = vector.broadcast %cst : f32 to vector<8x128xf32>
      %c0 = arith.constant 0 : index
      %c0_5 = arith.constant 0 : index
      %14 = vector.load %arg4[%c0, %c0_5] : memref<8x128xf32, #tpu.memory_space<vmem>>, vector<8x128xf32>
      tpu.vector_store %arg4[%c0, %c0_5], %13 {strides = array<i32>} : memref<8x128xf32, #tpu.memory_space<vmem>>, vector<8x128xf32>,
    } else {
    }
    %c1_i32 = arith.constant 1 : i32
    %3 = arith.muli %arg0, %c1_i32 : i32
    %4 = arith.addi %3, %arg1 : i32
    %c16_i32 = arith.constant 16 : i32
    %5 = arith.muli %4, %c16_i32 : i32
    %c16_i32_1 = arith.constant 16 : i32
    %6 = arith.addi %5, %c16_i32_1 : i32
    %c16_i32_2 = arith.constant 16 : i32
    %7 = arith.cmpi sle, %6, %c16_i32_2 : i32
    %8 = arith.extui %7 : i1 to i32
    %c0_i32_3 = arith.constant 0 : i32
    %9 = arith.cmpi ne, %8, %c0_i32_3 : i32
    scf.if %9 {
      %c0 = arith.constant 0 : index
      %c0_5 = arith.constant 0 : index
      %13 = vector.load %arg2[%c0, %c0_5] : memref<16x128xf32, #tpu.memory_space<vmem>>, vector<16x128xf32>
      %c0_6 = arith.constant 0 : index
      %c0_7 = arith.constant 0 : index
      %14 = vector.load %arg3[%c0_6, %c0_7] : memref<16x128xf32, #tpu.memory_space<vmem>>, vector<16x128xf32>
      %15 = arith.subf %13, %14 : vector<16x128xf32>
      %c0_8 = arith.constant 0 : index
      %c0_9 = arith.constant 0 : index
      %16 = vector.load %arg4[%c0_8, %c0_9] : memref<8x128xf32, #tpu.memory_space<vmem>>, vector<8x128xf32>
      %17 = arith.mulf %15, %15 : vector<16x128xf32>
      %18 = vector.shape_cast %17 : vector<16x128xf32> to vector<2x8x128xf32>
      %cst = arith.constant dense<0.000000e+00> : vector<8x128xf32>
      %19 = vector.multi_reduction <add>, %18, %cst [0] : vector<2x8x128xf32> to vector<8x128xf32>
      %20 = arith.addf %16, %19 : vector<8x128xf32>
      %c0_10 = arith.constant 0 : index
      %c0_11 = arith.constant 0 : index
      %21 = vector.load %arg4[%c0_10, %c0_11] : memref<8x128xf32, #tpu.memory_space<vmem>>, vector<8x128xf32>
      tpu.vector_store %arg4[%c0_10, %c0_11], %20 {strides = array<i32>} : memref<8x128xf32, #tpu.memory_space<vmem>>, vector<8x128xf32>,
    } else {
    }
    %true = arith.constant true
    %10 = arith.xori %7, %true : i1
    %11 = arith.extui %10 : i1 to i32
    %c0_i32_4 = arith.constant 0 : i32
    %12 = arith.cmpi ne, %11, %c0_i32_4 : i32
    scf.if %12 {
      %13 = tpu.iota {dimensions = array<i32: 0>} : vector<16x128xi32>
      %14 = vector.broadcast %5 : i32 to vector<16x128xi32>
      %15 = arith.addi %14, %13 : vector<16x128xi32>
      %c16_i32_5 = arith.constant 16 : i32
      %16 = vector.broadcast %c16_i32_5 : i32 to vector<16x128xi32>
      %17 = arith.cmpi slt, %15, %16 : vector<16x128xi32>
      %c0 = arith.constant 0 : index
      %c0_6 = arith.constant 0 : index
      %18 = vector.load %arg2[%c0, %c0_6] : memref<16x128xf32, #tpu.memory_space<vmem>>, vector<16x128xf32>
      %c0_7 = arith.constant 0 : index
      %c0_8 = arith.constant 0 : index
      %19 = vector.load %arg3[%c0_7, %c0_8] : memref<16x128xf32, #tpu.memory_space<vmem>>, vector<16x128xf32>
      %20 = arith.subf %18, %19 : vector<16x128xf32>
      %c0_9 = arith.constant 0 : index
      %c0_10 = arith.constant 0 : index
      %21 = vector.load %arg4[%c0_9, %c0_10] : memref<8x128xf32, #tpu.memory_space<vmem>>, vector<8x128xf32>
      %22 = arith.mulf %20, %20 : vector<16x128xf32>
      %cst = arith.constant 0.000000e+00 : f32
      %23 = vector.broadcast %cst : f32 to vector<16x128xf32>
      %24 = arith.select %17, %22, %23 : vector<16x128xi1>, vector<16x128xf32>
      %25 = vector.shape_cast %24 : vector<16x128xf32> to vector<2x8x128xf32>
      %cst_11 = arith.constant dense<0.000000e+00> : vector<8x128xf32>
      %26 = vector.multi_reduction <add>, %25, %cst_11 [0] : vector<2x8x128xf32> to vector<8x128xf32>
      %27 = arith.addf %21, %26 : vector<8x128xf32>
      %c0_12 = arith.constant 0 : index
      %c0_13 = arith.constant 0 : index
      %28 = vector.load %arg4[%c0_12, %c0_13] : memref<8x128xf32, #tpu.memory_space<vmem>>, vector<8x128xf32>
      tpu.vector_store %arg4[%c0_12, %c0_13], %27 {strides = array<i32>} : memref<8x128xf32, #tpu.memory_space<vmem>>, vector<8x128xf32>,
    } else {
    }
    return
  }
  func.func @transform_0(%arg0: i32, %arg1: i32) -> (i32, i32) {
    %c1_i32 = arith.constant 1 : i32
    %0 = arith.muli %arg0, %c1_i32 : i32
    %1 = arith.addi %0, %arg1 : i32
    %c0_i32 = arith.constant 0 : i32
    %2 = arith.minsi %1, %c0_i32 : i32
    %c0_i32_0 = arith.constant 0 : i32
    %c0_i32_1 = arith.constant 0 : i32
    return %2, %c0_i32_0 : i32, i32
  }
  func.func @transform_1(%arg0: i32, %arg1: i32) -> (i32, i32) {
    %c1_i32 = arith.constant 1 : i32
    %0 = arith.muli %arg0, %c1_i32 : i32
    %1 = arith.addi %0, %arg1 : i32
    %c0_i32 = arith.constant 0 : i32
    %2 = arith.minsi %1, %c0_i32 : i32
    %c0_i32_0 = arith.constant 0 : i32
    %c0_i32_1 = arith.constant 0 : i32
    return %2, %c0_i32_0 : i32, i32
  }
  func.func @transform_2(%arg0: i32, %arg1: i32) -> (i32, i32) {
    %c0_i32 = arith.constant 0 : i32
    %c0_i32_0 = arith.constant 0 : i32
    return %arg0, %c0_i32 : i32, i32
  }
}

</mosaic_0001>

<bundles_post_ra>
// kernel: tpu_custom_call.1
= control target key start
LH: loop header
LB: loop body
LE: loop exit
PB: predicated region body
PF: predicated region fallthrough
CT: control target
= control target key end

     0   :  { %7 = vsyncpa [#allocation3], 0  ;;  %s264_s0 = inlined_call_operand.hbm [shape: f32[16,128], index: 0, kind: input, shape index: {}]   ;;  %s265_s1 = inlined_call_operand.hbm [shape: f32[16,128], index: 1, kind: input, shape index: {}]   ;;  %s266_s2 = inlined_call_operand.hbm [shape: f32[8,128], index: 2, kind: output, shape index: {}]  }
   0x1   :  { %8 = vsyncpa [#allocation6], 0 }
   0x2   :  { %9 = vsyncpa [#allocation4], 0  ;;  %s208_s9 = smov [#allocation2]   ;;  %s136_s13 = scalar_lea.hbm %s264_s0, 256 }
   0x3   :  { %s21_s10 = sshll.u32 %s208_s9, 4  ;;  %p137_p0 = scmp.ne.s32.totalorder %s264_s0, %s136_s13  ;;  %s22_s10 = int_to_ptr.vmem [resolvable:$true] %s21_s10 }
   0x4   :  { %p140_p1 = scmp.lt.u32.totalorder %s136_s13, %s264_s0 }
   0x6   :  { %p142_p2 = pnand %p140_p1, %p137_p0 }
   0x8   :  { %145 = shalt.err (!%p142_p2)
}
   0x9   :  { %s146_s18 = scalar_lea.vmem %s22_s10, 256  ;;  %p151_p4 = scmp.lt.s32.totalorder %s22_s10, %s22_s10 }
   0xa   :  { %p147_p3 = scmp.ne.s32.totalorder %s22_s10, %s146_s18  ;;  %p152_p5 = scmp.lt.s32.totalorder %s146_s18, %s146_s18 }
   0xc   :  { %p153_p6 = por %p152_p5, %p151_p4 }
   0xe   :  { %p154_p7 = pnand %p153_p6, %p147_p3 }
  0x10   :  { %157 = shalt.err (!%p154_p7)
}
  0x11   :  { %s209_s19 = smov 128   ;;  %s210_s20 = smov 8  }
  0x12   :  { %27 = dma.hbm_to_vmem [thread:$0]  %s264_s0, 256, %s22_s10, [#allocation3], %s209_s19, %s209_s19, %s210_s20  }
  0x13   :  { %s211_s23 = smov [#allocation5]   ;;  %s158_s27 = scalar_lea.hbm %s265_s1, 256 }
  0x14   :  { %s39_s24 = sshll.u32 %s211_s23, 4  ;;  %p159_p8 = scmp.ne.s32.totalorder %s265_s1, %s158_s27  ;;  %s40_s24 = int_to_ptr.vmem [resolvable:$true] %s39_s24 }
  0x15   :  { %p162_p9 = scmp.lt.u32.totalorder %s158_s27, %s265_s1 }
  0x17   :  { %p164_p10 = pnand %p162_p9, %p159_p8 }
  0x19   :  { %167 = shalt.err (!%p164_p10)
}
  0x1a   :  { %s168_s4 = scalar_lea.vmem %s40_s24, 256  ;;  %p173_p12 = scmp.lt.s32.totalorder %s40_s24, %s40_s24 }
  0x1b   :  { %p169_p11 = scmp.ne.s32.totalorder %s40_s24, %s168_s4  ;;  %p174_p13 = scmp.lt.s32.totalorder %s168_s4, %s168_s4 }
  0x1d   :  { %p175_p0 = por %p174_p13, %p173_p12 }
  0x1f   :  { %p176_p1 = pnand %p175_p0, %p169_p11 }
  0x21   :  { %179 = shalt.err (!%p176_p1)
}
  0x22   :  { %45 = dma.hbm_to_vmem [thread:$0]  %s265_s1, 256, %s40_s24, [#allocation6], %s209_s19, %s209_s19, %s210_s20  }
  0x23   :  { %202 = dma.done.wait [#allocation3], 256  }
  0x24   :  { %203 = vsyncadd [#allocation3], 4294967040 }
  0x25   :  { %204 = dma.done.wait [#allocation6], 256  }
  0x26   :  { %205 = vsyncadd [#allocation6], 4294967040  ;;  %v72_v0 = vld [vmem:[#allocation2] sm:$0xff]  ;;  %v73_v1 = vld [vmem:[#allocation2 + $0x8] sm:$0xff]  ;;  %s212_s6 = smov [#allocation7]  }
  0x27   :  { %v74_v2 = vld [vmem:[#allocation5] sm:$0xff]  ;;  %v75_v3 = vld [vmem:[#allocation5 + $0x8] sm:$0xff]  ;;  %s116_s7 = sshll.u32 %s212_s6, 4  ;;  %s117_s7 = int_to_ptr.vmem [resolvable:$true] %s116_s7 }
  0x28   :  { %v76_v4 = vsub.f32 %v72_v0, %v74_v2  ;;  %v77_v5 = vsub.f32 %v73_v1, %v75_v3  ;;  %s180_s8 = scalar_lea.vmem %s117_s7, 128  ;;  %p185_p3 = scmp.lt.s32.totalorder %s117_s7, %s117_s7 }
  0x29   :  { %p181_p2 = scmp.ne.s32.totalorder %s117_s7, %s180_s8  ;;  %p186_p4 = scmp.lt.s32.totalorder %s180_s8, %s180_s8 }
  0x2a   :  { %v79_v6 = vmul.f32 %v76_v4, %v76_v4  ;;  %v80_v7 = vmul.f32 %v77_v5, %v77_v5 }
  0x2b   :  { %p187_p5 = por %p186_p4, %p185_p3 }
  0x2c   :  { %v81_v8 = vadd.f32 %v80_v7, %v79_v6 }
  0x2d   :  { %p188_p6 = pnand %p187_p5, %p181_p2 }
  0x2e   :  { %83 = vst [vmem:[#allocation7] sm:$0xff] %v81_v8 }
  0x2f   :  { %191 = shalt.err (!%p188_p6)
}
  0x30   :  { %s192_s10 = scalar_lea.hbm %s266_s2, 128 }
  0x31   :  { %p193_p7 = scmp.ne.s32.totalorder %s266_s2, %s192_s10  ;;  %p196_p8 = scmp.lt.u32.totalorder %s192_s10, %s266_s2 }
  0x33   :  { %p198_p9 = pnand %p196_p8, %p193_p7 }
  0x35   :  { %201 = shalt.err (!%p198_p9)
}
  0x36   :  { %119 = dma.vmem_to_hbm [thread:$0]  %s117_s7, 128, %s266_s2, [#allocation4]  }
  0x37   :  { %206 = dma.done.wait [#allocation4], 128  }
  0x38   :  { %207 = vsyncadd [#allocation4], 4294967168 }
  0x39   :  { %123 = vsyncpa [#allocation3], 1 }
  0x3a   :  { %124 = vsyncpa [#allocation6], 1 }
  0x3b   :  { %125 = vsyncpa [#allocation4], 1 }

</bundles_post_ra>
